<compile_context>
chip_gen: v7x
topology: tpu7x:2x2x1
jax: 0.10.0
libtpu: 0.0.40
codegen_flags: <defaults>
</compile_context>

<pallas_src>
import math

import jax
import jax.numpy as jnp
from jax import lax
from jax.experimental import pallas as pl
from jax.experimental.pallas import tpu as pltpu


# ----------------------------------------------------------------------------
# Kernel
# ----------------------------------------------------------------------------
def _mhsa_kernel(x_ref, w1t_ref, w2_ref, out_ref, attn_ref):
    # x_ref:    (bt, L, d_in)      batch tile in VMEM
    # w1t_ref:  (d_in, d_hidden)   pre-transposed weight, resident across grid
    # w2_ref:   (n_head, d_hidden) weight, resident across grid
    # out_ref:  (bt, n_head, d_in)
    # attn_ref: (bt, n_head, L)    lane-dense attention store
    bt, L, d_in = x_ref.shape
    n_head, d_hidden = w2_ref.shape
    dt = x_ref.dtype

    x3 = x_ref[...]                              # (bt, L, d_in)
    xf = x3.reshape(bt * L, d_in)                # fold batch -> tall MXU M tile

    # h = tanh(x @ w1^T): folded (bt*L, d_in) x (d_in, d_hidden), f32 acc.
    # tanh runs in the input dtype (bf16 EUP on v6e/v7x; no-op cast for f32).
    h = jnp.tanh(
        jnp.dot(xf, w1t_ref[...], preferred_element_type=jnp.float32).astype(dt))
    h3 = h.reshape(bt, L, d_hidden)              # leading-dim split (layout-safe)

    # logits directly in (bt, n_head, L): lane-dense over L, no lane-sparse
    # (bt*L, n_head) intermediate and no XLU lane transpose.  w2 is broadcast
    # over the batch tile once (tiny), then a flash-style batched contraction.
    w2b = jnp.broadcast_to(w2_ref[...], (bt, n_head, d_hidden))
    logits = lax.dot_general(
        w2b, h3,
        dimension_numbers=(((2,), (2,)), ((0,), (0,))),
        preferred_element_type=jnp.float32)      # (bt, n_head, L)

    # Softmax over the sequence axis (lane axis).
    m = jnp.max(logits, axis=-1, keepdims=True)
    e = jnp.exp(logits - m)
    denom = jnp.sum(e, axis=-1, keepdims=True)
    # EUP approximate reciprocal + one Newton-Raphson step -> ~f32 accuracy.
    inv = pl.reciprocal(denom, approx=True)
    inv = inv * (2.0 - denom * inv)
    attn_t = e * inv                             # (bt, n_head, L), f32

    attn_ref[...] = attn_t.astype(attn_ref.dtype)   # lane-dense store

    # output[b] = attn[b]^T @ x[b]: batched contraction over L, no transposes.
    out = lax.dot_general(
        attn_t.astype(dt), x3,
        dimension_numbers=(((2,), (1,)), ((0,), (0,))),
        preferred_element_type=jnp.float32)      # (bt, n_head, d_in)
    out_ref[...] = out.astype(out_ref.dtype)


# ----------------------------------------------------------------------------
# Tile sizing helpers (VMEM-budget and generation aware)
# ----------------------------------------------------------------------------
def _vmem_capacity_bytes():
    """Physical VMEM per TensorCore; conservative 64 MiB (v7x) if unknown."""
    try:
        return int(pltpu.get_tpu_info().vmem_capacity_bytes)
    except Exception:
        return 64 * 1024 * 1024


def _vmem_footprint(L, d_in, d_hidden, n_head, in_itemsize, out_itemsize):
    """(fixed_bytes, per_batch_element_bytes) VMEM estimate for one grid step."""
    per_b = (
        2 * L * d_in * in_itemsize              # x block (double-buffered)
        + 2 * n_head * d_in * out_itemsize      # out block (double-buffered)
        + 2 * n_head * L * out_itemsize         # attn block (double-buffered)
        + L * d_hidden * (4 + in_itemsize)      # h: f32 matmul acc + input-dtype copy
        + 3 * n_head * L * 4                    # logits / exp / attn (f32)
        + n_head * d_hidden * in_itemsize       # broadcast w2
        + n_head * d_in * 4                     # f32 output accumulator
        + L * d_in * 4                          # slack for fold/unfold copies
    )
    # Weights: constant index maps, but conservatively budget 2 buffers each.
    fixed = 2 * (d_in * d_hidden + n_head * d_hidden) * in_itemsize
    return fixed, per_b


def _choose_batch_tile(B, L, d_in, d_hidden, n_head, in_itemsize, out_itemsize,
                       vmem_bytes):
    # Working-set budget ~40% of physical VMEM (64 MiB on v7x, 128 MiB on
    # v5e/v6e), leaving headroom for compiler scratch / semaphores.
    budget = int(vmem_bytes * 0.40)
    fixed, per_b = _vmem_footprint(L, d_in, d_hidden, n_head, in_itemsize,
                                   out_itemsize)
    bt_vmem = max(1, (budget - fixed) // per_b)
    # Target a few thousand folded MXU rows (bt * L) per grid step; per-step
    # overhead (~0.35 us) dominates if tiles are small.
    bt_rows = max(1, -(-4096 // max(L, 1)))
    bt = int(min(B, bt_vmem, bt_rows))
    # Keep >= 2 grid steps when B >= 2 so ("parallel",) can use both
    # TensorCores on v7x megacore.
    if B >= 2:
        bt = min(bt, -(-B // 2))
    # Keep bt*L sublane-aligned for better MXU row fill (matters most for the
    # 4x128x128 MXU on v5e).
    if bt >= 16:
        bt -= bt % 8
    return max(1, bt)


# ----------------------------------------------------------------------------
# Wrapper
# ----------------------------------------------------------------------------
def multi_head_self_attention(x, w1, w2, *, batch_tile=None):
    """x: (B, L, d_in); w1: (d_hidden, d_in); w2: (n_head, d_hidden).

    Returns (output, attn) with the same layout as the PyTorch module:
    output (B, n_head, d_in) (squeezed if n_head == 1), attn (B, L, n_head).
    """
    B, L, d_in = x.shape
    d_hidden = w1.shape[0]
    n_head = w2.shape[0]
    in_itemsize = jnp.dtype(x.dtype).itemsize
    out_itemsize = in_itemsize

    vmem_bytes = _vmem_capacity_bytes()
    if batch_tile is None:
        bt = _choose_batch_tile(B, L, d_in, d_hidden, n_head, in_itemsize,
                                out_itemsize, vmem_bytes)
    else:
        bt = int(batch_tile)
    bt = max(1, min(bt, B))

    # Pad B to a multiple of bt (padded rows give finite garbage, sliced off),
    # avoiding the old "decrement bt until it divides B" degeneration.
    grid_b = pl.cdiv(B, bt)
    B_pad = grid_b * bt
    x_p = x if B_pad == B else jnp.pad(x, ((0, B_pad - B), (0, 0), (0, 0)))

    # Pre-transpose w1 once in XLA; w2 is consumed as (n_head, d_hidden).
    w1t = jnp.transpose(w1)                      # (d_in, d_hidden)

    # VMEM limit from the actual footprint, with headroom, capped below the
    # physical capacity of this generation.
    fixed, per_b = _vmem_footprint(L, d_in, d_hidden, n_head, in_itemsize,
                                   out_itemsize)
    need = fixed + bt * per_b
    vmem_limit = int(need * 1.25) + (2 << 20)
    vmem_limit = max(vmem_limit, 16 << 20)
    vmem_limit = min(vmem_limit, vmem_bytes - (8 << 20))

    flops = (2 * B_pad * L * d_hidden * (d_in + n_head)
             + 2 * B_pad * n_head * L * d_in)
    transcendentals = B_pad * L * d_hidden + B_pad * n_head * L   # tanh + exp
    bytes_accessed = (
        B_pad * L * d_in * in_itemsize
        + (d_in * d_hidden + n_head * d_hidden) * in_itemsize
        + B_pad * n_head * d_in * out_itemsize
        + B_pad * n_head * L * out_itemsize)
    cost = pl.CostEstimate(flops=flops, transcendentals=transcendentals,
                           bytes_accessed=bytes_accessed)

    out_p, attn_p = pl.pallas_call(
        _mhsa_kernel,
        out_shape=(
            jax.ShapeDtypeStruct((B_pad, n_head, d_in), x.dtype),
            jax.ShapeDtypeStruct((B_pad, n_head, L), x.dtype),
        ),
        grid_spec=pltpu.PrefetchScalarGridSpec(
            num_scalar_prefetch=0,
            grid=(grid_b,),
            in_specs=[
                pl.BlockSpec((bt, L, d_in), lambda b: (b, 0, 0)),
                # Constant index maps keep the weights resident across grid
                # steps (no re-DMA per batch tile).
                pl.BlockSpec((d_in, d_hidden), lambda b: (0, 0)),
                pl.BlockSpec((n_head, d_hidden), lambda b: (0, 0)),
            ],
            out_specs=[
                pl.BlockSpec((bt, n_head, d_in), lambda b: (b, 0, 0)),
                pl.BlockSpec((bt, n_head, L), lambda b: (b, 0, 0)),
            ],
        ),
        compiler_params=pltpu.CompilerParams(
            dimension_semantics=("parallel",),
            vmem_limit_bytes=int(vmem_limit)),
        cost_estimate=cost,
    )(x_p, w1t, w2)

    out = out_p[:B]
    # Caller-facing layout matches the PyTorch module: attn is (B, L, n_head).
    attn = jnp.transpose(attn_p[:B], (0, 2, 1))
    if out.shape[1] == 1:
        out = jnp.squeeze(out, axis=1)
    return out, attn


# ----------------------------------------------------------------------------
# Reference & test
# ----------------------------------------------------------------------------
def xavier_uniform(key, shape, dtype=jnp.float32):
    # torch.nn.init.xavier_uniform_ on a Linear weight (fan_out, fan_in)
    fan_out, fan_in = shape
    bound = math.sqrt(6.0 / (fan_in + fan_out))
    return jax.random.uniform(key, shape, dtype=dtype, minval=-bound, maxval=bound)


def reference(x, w1, w2):
    h = jnp.tanh(jnp.einsum("bld,hd->blh", x, w1))
    logits = jnp.einsum("blh,nh->bln", h, w2)
    attn = jax.nn.softmax(logits, axis=1)
    out = jnp.einsum("bln,bld->bnd", attn, x)
    if out.shape[1] == 1:
        out = jnp.squeeze(out, axis=1)
    return out, attn


if __name__ == "__main__":
    B, L, d_in, d_hidden, n_head = 2, 16, 32, 64, 4

    key = jax.random.PRNGKey(0)
    kx, k1, k2 = jax.random.split(key, 3)
    x = jax.random.normal(kx, (B, L, d_in), dtype=jnp.float32)
    w1 = xavier_uniform(k1, (d_hidden, d_in))
    w2 = xavier_uniform(k2, (n_head, d_hidden))

    out, attn = multi_head_self_attention(x, w1, w2)
    out = jax.block_until_ready(out)
    attn = jax.block_until_ready(attn)

    out_ref, attn_ref = reference(x, w1, w2)
    assert out.shape == (B, n_head, d_in)
    assert attn.shape == (B, L, n_head)
    assert jnp.allclose(out, out_ref, atol=1e-5, rtol=1e-5)
    assert jnp.allclose(attn, attn_ref, atol=1e-5, rtol=1e-5)

    print("KERNEL_OK")
</pallas_src>

<mosaic_0001>
module attributes {stable_mosaic.version = 11 : i64} {
  func.func @_mhsa_kernel(%arg0: i32, %arg1: memref<1x16x32xf32, #tpu.memory_space<vmem>>, %arg2: memref<32x64xf32, #tpu.memory_space<vmem>>, %arg3: memref<4x64xf32, #tpu.memory_space<vmem>>, %arg4: memref<1x4x32xf32, #tpu.memory_space<vmem>>, %arg5: memref<1x4x16xf32, #tpu.memory_space<vmem>>) attributes {dimension_semantics = [#tpu.dimension_semantics<parallel>], iteration_bounds = array<i64: 2>, scalar_prefetch = 0 : i64, scratch_operands = 0 : i64, tpu.core_type = #tpu.core_type<tc>, window_params = [{transform_indices = @transform_0, window_bounds = array<i64: 1, 16, 32>}, {pipeline_mode = #tpu.pipeline_mode<synchronous>, transform_indices = @transform_1, window_bounds = array<i64: 32, 64>}, {pipeline_mode = #tpu.pipeline_mode<synchronous>, transform_indices = @transform_2, window_bounds = array<i64: 4, 64>}, {transform_indices = @transform_3, window_bounds = array<i64: 1, 4, 32>}, {transform_indices = @transform_4, window_bounds = array<i64: 1, 4, 16>}]} {
    %c0 = arith.constant 0 : index
    %c0_0 = arith.constant 0 : index
    %c0_1 = arith.constant 0 : index
    %0 = vector.load %arg1[%c0, %c0_0, %c0_1] : memref<1x16x32xf32, #tpu.memory_space<vmem>>, vector<1x16x32xf32>
    %1 = vector.shape_cast %0 : vector<1x16x32xf32> to vector<16x32xf32>
    %c0_2 = arith.constant 0 : index
    %c0_3 = arith.constant 0 : index
    %2 = vector.load %arg2[%c0_2, %c0_3] : memref<32x64xf32, #tpu.memory_space<vmem>>, vector<32x64xf32>
    %cst = arith.constant dense<0.000000e+00> : vector<16x64xf32>
    %3 = tpu.matmul %1, %2, %cst {dimension_numbers = #tpu.dot_dimension_numbers<[1], [0], [0], [1], [0, 0, 1, 1], [], []>} : vector<16x32xf32>, vector<32x64xf32>, vector<16x64xf32> -> vector<16x64xf32>
    %4 = math.tanh %3 : vector<16x64xf32>
    %5 = vector.shape_cast %4 : vector<16x64xf32> to vector<1x16x64xf32>
    %c0_4 = arith.constant 0 : index
    %c0_5 = arith.constant 0 : index
    %6 = vector.load %arg3[%c0_4, %c0_5] : memref<4x64xf32, #tpu.memory_space<vmem>>, vector<4x64xf32>
    %7 = vector.shape_cast %6 : vector<4x64xf32> to vector<1x4x64xf32>
    %cst_6 = arith.constant dense<0.000000e+00> : vector<1x4x16xf32>
    %8 = tpu.matmul %7, %5, %cst_6 {dimension_numbers = #tpu.dot_dimension_numbers<[2], [2], [1], [1], [0, 0, 0, 1, 1, 1], [0], [0]>} : vector<1x4x64xf32>, vector<1x16x64xf32>, vector<1x4x16xf32> -> vector<1x4x16xf32>
    %cst_7 = arith.constant dense<0xFF800000> : vector<1x4xf32>
    %9 = vector.multi_reduction <maximumf>, %8, %cst_7 [2] : vector<1x4x16xf32> to vector<1x4xf32>
    %10 = vector.shape_cast %9 : vector<1x4xf32> to vector<1x4x1xf32>
    %11 = vector.broadcast %10 : vector<1x4x1xf32> to vector<1x4x16xf32>
    %12 = arith.subf %8, %11 : vector<1x4x16xf32>
    %13 = math.exp %12 : vector<1x4x16xf32>
    %cst_8 = arith.constant dense<0.000000e+00> : vector<1x4xf32>
    %14 = vector.multi_reduction <add>, %13, %cst_8 [2] : vector<1x4x16xf32> to vector<1x4xf32>
    %15 = vector.shape_cast %14 : vector<1x4xf32> to vector<1x4x1xf32>
    %16 = tpu.reciprocal %15 {approx = true} : vector<1x4x1xf32> -> vector<1x4x1xf32>
    %17 = arith.mulf %15, %16 : vector<1x4x1xf32>
    %cst_9 = arith.constant 2.000000e+00 : f32
    %18 = vector.broadcast %cst_9 : f32 to vector<1x4x1xf32>
    %19 = arith.subf %18, %17 : vector<1x4x1xf32>
    %20 = arith.mulf %16, %19 : vector<1x4x1xf32>
    %21 = vector.broadcast %20 : vector<1x4x1xf32> to vector<1x4x16xf32>
    %22 = arith.mulf %13, %21 : vector<1x4x16xf32>
    %c0_10 = arith.constant 0 : index
    %c0_11 = arith.constant 0 : index
    %c0_12 = arith.constant 0 : index
    %23 = vector.load %arg5[%c0_10, %c0_11, %c0_12] : memref<1x4x16xf32, #tpu.memory_space<vmem>>, vector<1x4x16xf32>
    tpu.vector_store %arg5[%c0_10, %c0_11, %c0_12], %22 {strides = array<i32>} : memref<1x4x16xf32, #tpu.memory_space<vmem>>, vector<1x4x16xf32>,
    %cst_13 = arith.constant dense<0.000000e+00> : vector<1x4x32xf32>
    %24 = tpu.matmul %22, %0, %cst_13 {dimension_numbers = #tpu.dot_dimension_numbers<[2], [1], [1], [2], [0, 0, 0, 1, 1, 2], [0], [0]>} : vector<1x4x16xf32>, vector<1x16x32xf32>, vector<1x4x32xf32> -> vector<1x4x32xf32>
    %c0_14 = arith.constant 0 : index
    %c0_15 = arith.constant 0 : index
    %c0_16 = arith.constant 0 : index
    %25 = vector.load %arg4[%c0_14, %c0_15, %c0_16] : memref<1x4x32xf32, #tpu.memory_space<vmem>>, vector<1x4x32xf32>
    tpu.vector_store %arg4[%c0_14, %c0_15, %c0_16], %24 {strides = array<i32>} : memref<1x4x32xf32, #tpu.memory_space<vmem>>, vector<1x4x32xf32>,
    return
  }
  func.func @transform_0(%arg0: i32) -> (i32, i32, i32) {
    %c0_i32 = arith.constant 0 : i32
    %c0_i32_0 = arith.constant 0 : i32
    %c0_i32_1 = arith.constant 0 : i32
    return %arg0, %c0_i32, %c0_i32_0 : i32, i32, i32
  }
  func.func @transform_1(%arg0: i32) -> (i32, i32) {
    %c0_i32 = arith.constant 0 : i32
    %c0_i32_0 = arith.constant 0 : i32
    %c0_i32_1 = arith.constant 0 : i32
    return %c0_i32, %c0_i32_0 : i32, i32
  }
  func.func @transform_2(%arg0: i32) -> (i32, i32) {
    %c0_i32 = arith.constant 0 : i32
    %c0_i32_0 = arith.constant 0 : i32
    %c0_i32_1 = arith.constant 0 : i32
    return %c0_i32, %c0_i32_0 : i32, i32
  }
  func.func @transform_3(%arg0: i32) -> (i32, i32, i32) {
    %c0_i32 = arith.constant 0 : i32
    %c0_i32_0 = arith.constant 0 : i32
    %c0_i32_1 = arith.constant 0 : i32
    return %arg0, %c0_i32, %c0_i32_0 : i32, i32, i32
  }
  func.func @transform_4(%arg0: i32) -> (i32, i32, i32) {
    %c0_i32 = arith.constant 0 : i32
    %c0_i32_0 = arith.constant 0 : i32
    %c0_i32_1 = arith.constant 0 : i32
    return %arg0, %c0_i32, %c0_i32_0 : i32, i32, i32
  }
}

</mosaic_0001>

<bundles_post_ra>
// kernel: tpu_custom_call.1
= control target key start
LH: loop header
LB: loop body
LE: loop exit
PB: predicated region body
PF: predicated region fallthrough
CT: control target
= control target key end

     0   :  { %10 = vsyncpa [#allocation3], 0  ;;  %s1240_s0 = inlined_call_operand.hbm [shape: f32[2,16,32], index: 0, kind: input, shape index: {}]   ;;  %s1241_s1 = inlined_call_operand.hbm [shape: f32[32,64], index: 1, kind: input, shape index: {}]   ;;  %s1242_s2 = inlined_call_operand.vmem [shape: f32[4,64], index: 2, kind: input, shape index: {}]   ;;  %s1243_s3 = inlined_call_operand.hbm [shape: f32[2,4,32], index: 3, kind: output, shape index: {0}]   ;;  %s1244_s4 = inlined_call_operand.hbm [shape: f32[2,4,16], index: 4, kind: output, shape index: {1}]  }
   0x1   :  { %12 = vsyncpa [#allocation3 + $0x1], 0 }
   0x2   :  { %13 = vsyncpa [#allocation6], 0 }
   0x3   :  { %14 = vsyncpa [#allocation4], 0 }
   0x4   :  { %16 = vsyncpa [#allocation4 + $0x1], 0 }
   0x5   :  { %17 = vsyncpa [#allocation9], 0 }
   0x6   :  { %19 = vsyncpa [#allocation9 + $0x1], 0  ;;  %s997_s15 = smov 0   ;;  %s999_s16 = smov 0  }
   0x7   :  { %s1001_s17 = smov 0   ;;  %s1003_s18 = smov 0  }
   0x8 LB: > { %s1018_s19 = sadd.s32 4294967295, %s961_s18   ;;  %s649_s20 = sadd.s32 4294967294, %s961_s18   ;;  %s961_s18 = sphi %s1003_s18, %s1264_s18   ;;  %s957_s17 = sphi %s1001_s17, %s1263_s17   ;;  %s953_s16 = sphi %s999_s16, %s1262_s16   ;;  %s949_s15 = sphi %s997_s15, %s1261_s15  }
   0x9   : > { %p45_p0 = scmp.ne.s32.totalorder %s953_s16, %s949_s15  ;;  %p1245_p1 = scmp.eq.s32.totalorder %s1018_s19, 0 }
   0xa   : > { %p117_p3 = scmp.eq.s32.totalorder %s649_s20, 1  ;;  %p650_p5 = scmp.ge.s32.totalorder %s961_s18, 1 }
   0xb   : > { %p1027_p4 = por %p1245_p1, %p45_p0  ;;  %p150_p7 = scmp.lt.s32.totalorder %s961_s18, 3 }
   0xc   : > { %p1032_p6 = por %p117_p3, %p45_p0  ;;  %s963_s24 = smov [#allocation5]  }
   0xd   : > { %s1248_s21 = scalar_select %p1027_p4, 1, 0 }
   0xe   : > { %s1249_s22 = scalar_select %p1032_p6, 1, 0 }
   0xf   : > { %p1037_p8 = pnand %p650_p5, %p150_p7  ;;  %s162_s25 = sshll.u32 %s963_s24, 4  ;;  %s1041_s25 = int_to_ptr.vmem [resolvable:$true] %s162_s25 }
  0x10   : > { %s1053_s27 = sadd.s32 1, %s961_s18   ;;  %s32_s28 = sadd.s32 1, %s957_s17 }
  0x11   : > { %s1250_s23 = scalar_select %p1037_p8, 1, 0 }
  0x12   : > { %p736_p9 = pneg %p1037_p8  ;;  %s29_s29 = ssub.s32 %s961_s18, %s1053_s27 }
  0x13   : > { %s801_s6 = scalar_lea.hbm %s1241_s1, 512 }
  0x14   : > { %p1048_p11 = pnand %p736_p9, %p1245_p1  ;;  %p802_p12 = scmp.ne.s32.totalorder %s1241_s1, %s801_s6 }
  0x15   : > { %p808_p5 = scmp.lt.u32.totalorder %s801_s6, %s1241_s1 }
  0x16   : > { %p803_p13 = pneg %p1048_p11 }
  0x18   : > { %p804_p0 = pnand %p803_p13, %p802_p12 }
  0x1a   : > { %p805_p3 = pneg %p804_p0 }
  0x1c   : > { %p810_p7 = pnand %p808_p5, %p805_p3 }
  0x1e   : > { %813 = shalt.err (!%p810_p7)
}
  0x1f   : > { %s814_s11 = scalar_lea.vmem %s1041_s25, 512  ;;  %p822_p2 = scmp.lt.s32.totalorder %s1041_s25, %s1041_s25 }
  0x20   : > { %p815_p9 = scmp.ne.s32.totalorder %s1041_s25, %s814_s11  ;;  %p823_p6 = scmp.lt.s32.totalorder %s814_s11, %s814_s11 }
  0x22   : > { %p817_p10 = pnand %p815_p9, %p803_p13  ;;  %p824_p4 = por %p823_p6, %p822_p2 }
  0x24   : > { %p818_p1 = pneg %p817_p10 }
  0x26   : > { %p825_p8 = pnand %p824_p4, %p818_p1 }
  0x28   : > { %828 = shalt.err (!%p825_p8)
}
  0x29   : > { %s964_s12 = smov 128   ;;  %s965_s13 = smov 8  }
  0x2a   : > { %739 = dma.hbm_to_vmem [thread:$0]  (!%p1048_p11), %s1241_s1, 512, %s1041_s25, [#allocation6], %s964_s12, %s964_s12, %s965_s13  }
  0x2b   : > { %p30_p1 = scmp.eq.s32.totalorder %s29_s29, 0  ;;  %p39_p2 = scmp.ne.s32.totalorder %s957_s17, %s953_s16 }
  0x2c   : > { %p40_p4 = scmp.eq.s32.totalorder %s961_s18, 0  ;;  %p752_p6 = scmp.lt.s32.totalorder %s961_s18, 2 }
  0x2d   : > { %s1087_s24 = scalar_select %p30_p1, %s957_s17, %s32_s28  }
  0x2e   : > { %p41_p8 = por %p40_p4, %p39_p2  ;;  %p1252_p10 = scmp.eq.s32.totalorder %s1018_s19, 1 }
  0x2f   : > { %s179_s26 = sand.u32 1, %s957_s17   ;;  %s673_s5 = sshll.u32 %s961_s18, 8 }
  0x30   : > { %p1091_p12 = por %p1252_p10, %p39_p2  ;;  %s653_s6 = sshll.u32 %s179_s26, 4 }
  0x31   : > { %s1100_s9 = scalar_lea.hbm %s1240_s0, %s673_s5  ;;  %s183_s25 = scalar_lea.vmem [#allocation2], %s653_s6 }
  0x32   : > { %s190_s28 = sshll.u32 %s183_s25, 4  ;;  %p1102_p11 = pnand %p752_p6, %p41_p8  ;;  %s1106_s28 = int_to_ptr.vmem [resolvable:$true] %s190_s28 }
  0x33   : > { %s1108_s10 = scalar_lea.sflag [#allocation3], %s179_s26  ;;  %s829_s11 = scalar_lea.hbm %s1100_s9, 256 }
  0x34   : > { %p830_p13 = scmp.ne.s32.totalorder %s1100_s9, %s829_s11  ;;  %p831_p0 = pneg %p1102_p11 }
  0x35   : > { %s834_s5 = scalar_lea.hbm %s1240_s0, 512  ;;  %p835_p7 = scmp.lt.u32.totalorder %s1100_s9, %s1240_s0 }
  0x36   : > { %p832_p3 = pnand %p831_p0, %p830_p13  ;;  %p836_p9 = scmp.lt.u32.totalorder %s834_s5, %s829_s11 }
  0x37   : > { %p838_p2 = scmp.lt.u32.totalorder %s829_s11, %s1100_s9 }
  0x38   : > { %p833_p5 = pneg %p832_p3  ;;  %p837_p1 = por %p836_p9, %p835_p7 }
  0x3a   : > { %p839_p4 = por %p838_p2, %p837_p1 }
  0x3c   : > { %p840_p6 = pnand %p839_p4, %p833_p5 }
  0x3e   : > { %843 = shalt.err (!%p840_p6)
}
  0x3f   : > { %s844_s26 = scalar_lea.vmem %s1106_s28, 256  ;;  %s966_s8 = smov [#allocation2]  }
  0x40   : > { %p845_p8 = scmp.ne.s32.totalorder %s1106_s28, %s844_s26  ;;  %s849_s25 = sshll.u32 %s966_s8, 4  ;;  %s850_s25 = int_to_ptr.vmem [resolvable:$false] %s849_s25 }
  0x41   : > { %s851_s14 = scalar_lea.vmem %s850_s25, 512  ;;  %p852_p3 = scmp.lt.s32.totalorder %s1106_s28, %s850_s25 }
  0x42   : > { %p847_p10 = pnand %p845_p8, %p831_p0  ;;  %p853_p7 = scmp.lt.s32.totalorder %s851_s14, %s844_s26 }
  0x44   : > { %p848_p13 = pneg %p847_p10  ;;  %p854_p9 = por %p853_p7, %p852_p3 }
  0x46   : > { %p855_p1 = pnand %p854_p9, %p848_p13 }
  0x48   : > { %858 = shalt.err (!%p855_p1)
}
  0x49   : > { %743 = dma.hbm_to_vmem [thread:$0]  (!%p1102_p11), %s1100_s9, 256, %s1106_s28, %s1108_s10, %s964_s12, %s964_s12, %s965_s13  }
  0x4a   : > { %p1255_p0 = scmp.ne.s32.totalorder %s1250_s23, 0 }
  0x4b   : > { %s1142_s11 = sand.u32 (!%p1255_p0), 1, %s953_s16   ;;  %p1256_p5 = scmp.ne.s32.totalorder (!%p1255_p0), %s1248_s21, 0 }
  0x4c   : > { %202 = sbr.rel (%p1255_p0) target bundleno = 1089 (0x441), region = 32  ;;  %s657_s20 = sshll.u32 (!%p1255_p0), %s1142_s11, 4 }
  0x4d   : > { %s205_s5 = scalar_lea.sflag (!%p1255_p0), [#allocation3], %s1142_s11  ;;  %s208_s6 = scalar_lea.vmem (!%p1255_p0), [#allocation2], %s657_s20 }
  0x53   : > { %932 = dma.done.wait (%p1256_p5), %s205_s5, 256  }
  0x54   : > { %934 = vsyncadd (%p1256_p5), %s205_s5, 4294967040  ;;  %p1257_p2 = scmp.eq.s32.totalorder %s1018_s19, 0 }
  0x56   : > { %936 = dma.done.wait (%p1257_p2), [#allocation6], 512   ;;  %p1258_p11 = pmov %p1257_p2 }
  0x57   : > { %vm248_vm0 = vcmask 261120   ;;  %v244_v0 = vld [vmem:[#allocation5] sm:$0xff]  ;;  %v245_v1 = vld [vmem:[#allocation5 + $0x8] sm:$0xff]  ;;  %v246_v2 = vld [vmem:[#allocation5 + $0x10] sm:$0xff]  ;;  %v967_v9 = vmov 0.0|0.0   ;;  %vm968_vm1 = vmmov 0  }
  0x58   : > { %938 = vsyncadd (%p1258_p11), [#allocation6], 4294966784  ;;  %v711_v3 = vpack.c.bf16 %v245_v1, %v244_v0  ;;  %v247_v4 = vld [vmem:[#allocation5 + $0x18] sm:$0xff]  ;;  %v242_v5 = vld [vmem:[%s208_s6] sm:$0xff]  ;;  %719 = vmatprep.subr.bf16.mxu1 %v967_v9  ;;  %v969_v10 = vmov 0.0   ;;  %vm333_vm2 = vcmask 523264  }
  0x59   : > { %v243_v6 = vld [vmem:[%s208_s6 + $0x8] sm:$0xff]  ;;  %v715_v7 = vpack.c.bf16 %v247_v4, %v246_v2  ;;  %694 = vmatprep.mubr.msk.f32.mxu0 %vm248_vm0, %v242_v5  ;;  %701 = vmatprep.mubr.msk.f32.mxu1 %vm968_vm1, %v969_v10  ;;  %vm721_vm3 = vmpackc.low %vm333_vm2, %vm333_vm2  ;;  %v332_v16 = vld [vmem:[%s1242_s2] sm:$0xf]  ;;  %vm413_vm4 = vcmask 125952   ;;  %s659_s12 = sshll.u32 %s1142_s11, 2  ;;  %vm429_vm5 = vcmask 130048  }
  0x5a   : > { %v724_v8 = vpack.c.bf16 %v243_v6, %v242_v5  ;;  %712 = vmatprep.subr.bf16.mxu0 %v711_v3  ;;  %s241_s13 = scalar_lea.vmem [#allocation8], %s659_s12  ;;  %s669_s9 = sshll.u32 %s1018_s19, 6 }
  0x5b   : > { %714 = vmatpush3.bf16.msra.mxu0 %v711_v3  ;;  %s1169_s10 = scalar_lea.hbm %s1244_s4, %s669_s9  ;;  %s537_s7 = sshll.u32 %s241_s13, 4  ;;  %s538_s7 = int_to_ptr.vmem [resolvable:$true] %s537_s7 }
  0x5c   : > { %716 = vmatprep.subr.bf16.mxu0 %v715_v7  ;;  %s511_s26 = scalar_lea.sflag [#allocation9], %s1142_s11  ;;  %s859_s8 = scalar_lea.vmem %s538_s7, 64 }
  0x5d   : > { %p860_p4 = scmp.ne.s32.totalorder %s538_s7, %s859_s8  ;;  %s970_s25 = smov [#allocation8]  }
  0x5e   : > { %s863_s14 = sshll.u32 %s970_s25, 4  ;;  %s864_s14 = int_to_ptr.vmem [resolvable:$false] %s863_s14 }
  0x5f   : > { %718 = vmatpush3.bf16.msra.mxu0 %v715_v7  ;;  %p861_p6 = pnand %p860_p4, %p1091_p12  ;;  %s865_s20 = scalar_lea.vmem %s864_s14, 128 }
  0x60   : > { %723 = vmatprep.subr.bf16.mxu0 %v967_v9  ;;  %p866_p10 = scmp.lt.s32.totalorder %s538_s7, %s864_s14  ;;  %p867_p13 = scmp.lt.s32.totalorder %s865_s20, %s859_s8 }
  0x61   : > { %p862_p8 = pneg %p861_p6 }
  0x62   : > { %695 = vmatmul.mubr.msk.f32.vlgmr.msra.gmra.mrb[0].mxu0 %vm248_vm0, %v243_v6  ;;  %p868_p3 = por %p867_p13, %p866_p10 }
  0x63   : > { %725 = vmatpush3.bf16.msra.mxu0 %v724_v8  ;;  %708 = vmatprep.mubr.msk.f32.mxu0 %vm968_vm1, %v969_v10 }
  0x64   : > { %p869_p7 = pnand %p868_p3, %p862_p8 }
 0x135   : > { %v696_v11 = vpop.f32.mrb[0].mxu0 }
 0x136   : > { %793 = vtanh.f32 %v696_v11  ;;  %v321_v12 = vpop.f32.mrb[1].mxu0 }
 0x137   : > { %795 = vtanh.f32 %v321_v12 }
 0x140   : > { %v794_v13 = vpop.eup %793 }
 0x141   : > { %v796_v14 = vpop.eup %795 }
 0x142   : > { %v720_v15 = vpack.c.bf16 %v794_v13, %v796_v14 }
 0x144   : > { %722 = vmatpush3.bf16.xpose.msk.msra.mxu1 %vm721_vm3, %v720_v15 }
 0x14b   : > { %702 = vmatmul.mubr.msk.f32.vlgmr.msra.gmra.mrb[0].mxu1 %vm333_vm2, %v332_v16 }
 0x21e   : > { %v409_v17 = vpop.f32.mrb[0].mxu1 }
 0x21f   : > { %v703_v18 = vpop.f32.mrb[1].mxu1  ;;  %v414_v19 = vsel %vm413_vm4, %v409_v17, -inf }
 0x220   : > { %415 = vmax.xlane.f32.xlu0 %v414_v19 }
 0x2ad   : > { %v416_v20 = vpop.xlane.xlu0 %415 }
 0x2ae   : > { %v417_v21 = vsub.f32 %v409_v17, %v416_v20 }
 0x2b0   : > { %v418_v22 = vmul.f32 1.442695, %v417_v21 }
 0x2b2   : > { %797 = vpow2.f32 %v418_v22 }
 0x2bc   : > { %v798_v23 = vpop.eup %797 }
 0x2bd   : > { %v420_v24 = vsel %vm413_vm4, %v798_v23, 0.0 }
 0x2be   : > { %421 = vadd.xlane.f32.xlu0 %v420_v24 }
 0x34b   : > { %v422_v25 = vpop.xlane.xlu0 %421 }
 0x34c   : > { %799 = vrcp.f32 %v422_v25 }
 0x356   : > { %v800_v26 = vpop.eup %799 }
 0x357   : > { %v424_v27 = vmul.f32 %v800_v26, %v422_v25 }
 0x359   : > { %v425_v28 = vsub.f32 2.0, %v424_v27 }
 0x35b   : > { %v426_v29 = vmul.f32 %v800_v26, %v425_v28 }
 0x35d   : > { %v427_v30 = vmul.f32 %v798_v23, %v426_v29 }
 0x35f   : > { %709 = vmatmul.mubr.msk.f32.vlgmr.msra.gmra.mrb[2].mxu0 %vm429_vm5, %v427_v30  ;;  %428 = vst.msk [vmem:[%s241_s13] sm:$0xf] %vm413_vm4, %v427_v30 }
 0x360   : > { %872 = shalt.err (!%p869_p7)
}
 0x361   : > { %s873_s5 = scalar_lea.hbm %s1169_s10, 64  ;;  %s877_s23 = scalar_lea.hbm %s1244_s4, 128 }
 0x362   : > { %p874_p9 = scmp.ne.s32.totalorder %s1169_s10, %s873_s5  ;;  %p878_p5 = scmp.lt.u32.totalorder %s1169_s10, %s1244_s4 }
 0x363   : > { %p879_p2 = scmp.lt.u32.totalorder %s877_s23, %s873_s5  ;;  %p881_p4 = scmp.lt.u32.totalorder %s873_s5, %s1169_s10 }
 0x364   : > { %p875_p1 = pnand %p874_p9, %p1091_p12 }
 0x365   : > { %p880_p11 = por %p879_p2, %p878_p5 }
 0x366   : > { %p876_p0 = pneg %p875_p1 }
 0x367   : > { %p882_p6 = por %p881_p4, %p880_p11 }
 0x369   : > { %p883_p8 = pnand %p882_p6, %p876_p0 }
 0x36b   : > { %886 = shalt.err (!%p883_p8)
}
 0x36c   : > { %733 = dma.vmem_to_hbm [thread:$0]  (%p1091_p12), %s538_s7, 64, %s1169_s10, %s511_s26   ;;  %vm503_vm6 = vcmask 257024  }
 0x36d   : > { %s234_s29 = scalar_lea.vmem [#allocation7], %s659_s12  ;;  %s1196_s20 = scalar_lea.hbm %s1243_s3, %s669_s9 }
 0x36e   : > { %s524_s8 = sshll.u32 %s234_s29, 4  ;;  %s506_s5 = scalar_lea.sflag [#allocation4], %s1142_s11  ;;  %s1198_s8 = int_to_ptr.vmem [resolvable:$true] %s524_s8 }
 0x36f   : > { %s887_s10 = scalar_lea.vmem %s1198_s8, 64  ;;  %s971_s19 = smov [#allocation7]  }
 0x370   : > { %p888_p10 = scmp.ne.s32.totalorder %s1198_s8, %s887_s10  ;;  %s891_s12 = sshll.u32 %s971_s19, 4  ;;  %s892_s12 = int_to_ptr.vmem [resolvable:$false] %s891_s12 }
 0x371   : > { %s893_s7 = scalar_lea.vmem %s892_s12, 128  ;;  %p894_p7 = scmp.lt.s32.totalorder %s1198_s8, %s892_s12 }
 0x372   : > { %p889_p13 = pnand %p888_p10, %p1091_p12  ;;  %p895_p9 = scmp.lt.s32.totalorder %s893_s7, %s887_s10 }
 0x374   : > { %p890_p3 = pneg %p889_p13  ;;  %p896_p1 = por %p895_p9, %p894_p7 }
 0x376   : > { %p897_p0 = pnand %p896_p1, %p890_p3 }
 0x432   : > { %v499_v31 = vpop.f32.mrb[2].mxu0 }
 0x433   : > { %504 = vst.msk [vmem:[%s234_s29] sm:$0xf] %vm503_vm6, %v499_v31  ;;  %v710_v32 = vpop.f32.mrb[3].mxu0 }
 0x434   : > { %900 = shalt.err (!%p897_p0)
}
 0x435   : > { %s901_s11 = scalar_lea.hbm %s1196_s20, 64  ;;  %s905_s6 = scalar_lea.hbm %s1243_s3, 128 }
 0x436   : > { %p902_p5 = scmp.ne.s32.totalorder %s1196_s20, %s901_s11  ;;  %p906_p4 = scmp.lt.u32.totalorder %s1196_s20, %s1243_s3 }
 0x437   : > { %p907_p6 = scmp.lt.u32.totalorder %s905_s6, %s901_s11  ;;  %p909_p10 = scmp.lt.u32.totalorder %s901_s11, %s1196_s20 }
 0x438   : > { %p903_p2 = pnand %p902_p5, %p1091_p12 }
 0x439   : > { %p908_p8 = por %p907_p6, %p906_p4 }
 0x43a   : > { %p904_p11 = pneg %p903_p2 }
 0x43b   : > { %p910_p13 = por %p909_p10, %p908_p8 }
 0x43d   : > { %p911_p3 = pnand %p910_p13, %p904_p11 }
 0x43f   : > { %914 = shalt.err (!%p911_p3)
}
 0x440   : > { %732 = dma.vmem_to_hbm [thread:$0]  (%p1091_p12), %s1198_s8, 64, %s1196_s20, %s506_s5  }
 0x441 PF: > { %s549_s13 = sand.u32 1, %s949_s15   ;;  %p1259_p7 = scmp.ne.s32.totalorder %s1249_s22, 0 }
 0x442   : > { %p1260_p9 = scmp.ge.s32.totalorder %s961_s18, 2  ;;  %s550_s28 = scalar_lea.sflag [#allocation4], %s549_s13 }
 0x444   : > { %p745_p1 = pnand %p1260_p9, %p1259_p7 }
 0x446   : > { %940 = dma.done.wait (!%p745_p1), %s550_s28, 64  }
 0x447   : > { %942 = vsyncadd (!%p745_p1), %s550_s28, 4294967232  ;;  %s559_s29 = scalar_lea.sflag [#allocation9], %s549_s13 }
 0x448   : > { %944 = dma.done.wait (!%p745_p1), %s559_s29, 64  }
 0x449   : > { %946 = vsyncadd (!%p745_p1), %s559_s29, 4294967232  ;;  %p22_p12 = scmp.ge.s32.totalorder %s1053_s27, 4   ;;  %s1261_s15 = smov %s953_s16 }
 0x44a   : > { %s1262_s16 = smov %s957_s17  ;;  %s1263_s17 = smov %s1087_s24 }
 0x44b   : > { %s1264_s18 = smov %s1053_s27  ;;  %24 = sbr.rel (!%p22_p12) target bundleno = 8 (0x8), region = 98 }
 0x452   :  { %564 = vsyncpa [#allocation3], 1 }
 0x453   :  { %566 = vsyncpa [#allocation3 + $0x1], 1 }
 0x454   :  { %567 = vsyncpa [#allocation6], 1 }
 0x455   :  { %568 = vsyncpa [#allocation4], 1 }
 0x456   :  { %570 = vsyncpa [#allocation4 + $0x1], 1 }
 0x457   :  { %571 = vsyncpa [#allocation9], 1 }
 0x458   :  { %573 = vsyncpa [#allocation9 + $0x1], 1 }

</bundles_post_ra>
